<compile_context>
chip_gen: v6e
topology: v6e:2x2x1
jax: 0.10.0
libtpu: 0.0.40
codegen_flags: <defaults>
</compile_context>

<pallas_src>
import functools

import jax
import jax.numpy as jnp
from jax.experimental import pallas as pl
from jax.experimental.pallas import tpu as pltpu

_LANE = 128
_FUSED_VMEM_LIMIT = 6 * 1024 * 1024  # bytes; conservative for v7x (64 MiB VMEM)


def _round_up(x, m):
    return ((x + m - 1) // m) * m


# --------------------------- fused (small) path -----------------------------
def _fused_kernel(adj_ref, x_ref, wt_ref, b_ref, out_ref):
    # support = x @ W.T + b ; out = adj @ support  (all resident in VMEM)
    support = (
        jnp.dot(x_ref[...], wt_ref[...], preferred_element_type=jnp.float32)
        + b_ref[...]
    )
    out_ref[...] = jnp.dot(
        adj_ref[...],
        support.astype(adj_ref.dtype),
        preferred_element_type=jnp.float32,
    ).astype(out_ref.dtype)


# ------------------------------ tiled path ----------------------------------
def _linear_kernel(x_ref, wt_ref, b_ref, out_ref):
    # support = x @ W.T + b   (W already transposed in the wrapper)
    out_ref[...] = (
        jnp.dot(x_ref[...], wt_ref[...], preferred_element_type=jnp.float32)
        + b_ref[...]
    ).astype(out_ref.dtype)


def _spmm_kernel(adj_ref, sup_ref, out_ref, acc_ref):
    # out[i] = sum_k adj[i, k] @ support[k]; k is the last ('arbitrary') axis.
    k = pl.program_id(1)

    @pl.when(k == 0)
    def _():
        acc_ref[...] = jnp.zeros_like(acc_ref)

    acc_ref[...] += jnp.dot(
        adj_ref[...], sup_ref[...], preferred_element_type=jnp.float32
    )

    @pl.when(k == pl.num_programs(1) - 1)
    def _():
        out_ref[...] = acc_ref[...].astype(out_ref.dtype)


@functools.partial(
    jax.jit, static_argnames=("tile", "compute_dtype", "allow_fused")
)
def graph_convolution_layer(adj, x, weight, bias, *, tile=256,
                            compute_dtype=jnp.bfloat16, allow_fused=True):
    """adj: (N, N), x: (N, Fin), weight: (Fout, Fin), bias: (Fout,) -> (N, Fout)."""
    n, fin = x.shape
    fout, fin_w = weight.shape
    assert fin_w == fin, (weight.shape, x.shape)

    # Tile size: a multiple of 128, shrunk for tiny graphs.
    t = min(_round_up(tile, _LANE), _round_up(n, _LANE))
    n_pad = _round_up(n, t)
    fin_pad = _round_up(fin, _LANE)
    fout_pad = _round_up(fout, _LANE)

    f32 = jnp.float32
    adj_bytes = jnp.dtype(compute_dtype).itemsize
    # Zero-padding is exact: padded feature columns / nodes never contribute,
    # and padded output rows/cols are sliced away at the end.
    x_p = jnp.zeros((n_pad, fin_pad), f32).at[:n, :fin].set(x.astype(f32))
    wt_p = jnp.zeros((fin_pad, fout_pad), f32).at[:fin, :fout].set(
        weight.astype(f32).T)
    b_p = jnp.zeros((1, fout_pad), f32).at[0, :fout].set(bias.astype(f32))
    adj_p = jnp.zeros((n_pad, n_pad), compute_dtype).at[:n, :n].set(
        adj.astype(compute_dtype))

    # ---------------- fused path: everything resident in VMEM ----------------
    fused_bytes = (
        n_pad * n_pad * adj_bytes          # adj
        + n_pad * fin_pad * 4              # x
        + fin_pad * fout_pad * 4           # W.T
        + fout_pad * 4                     # bias
        + 2 * n_pad * fout_pad * 4         # support (intermediate) + out
    )
    if allow_fused and fused_bytes <= _FUSED_VMEM_LIMIT:
        out_p = pl.pallas_call(
            _fused_kernel,
            out_shape=jax.ShapeDtypeStruct((n_pad, fout_pad), jnp.float32),
        )(adj_p, x_p, wt_p, b_p)
        return out_p[:n, :fout]

    # ---- Stage 1: support = x @ W.T + b, computed once (not per adj tile) ---
    support = pl.pallas_call(
        _linear_kernel,
        out_shape=jax.ShapeDtypeStruct((n_pad, fout_pad), compute_dtype),
        grid_spec=pltpu.PrefetchScalarGridSpec(
            num_scalar_prefetch=0,
            grid=(n_pad // t,),
            in_specs=[
                pl.BlockSpec((t, fin_pad), lambda i: (i, 0)),
                pl.BlockSpec((fin_pad, fout_pad), lambda i: (0, 0)),
                pl.BlockSpec((1, fout_pad), lambda i: (0, 0)),
            ],
            out_specs=pl.BlockSpec((t, fout_pad), lambda i: (i, 0)),
        ),
        compiler_params=pltpu.CompilerParams(
            dimension_semantics=("parallel",)),
    )(x_p, wt_p, b_p)

    # ---- Stage 2: out = adj @ support, tiled with an f32 VMEM accumulator ---
    out_p = pl.pallas_call(
        _spmm_kernel,
        out_shape=jax.ShapeDtypeStruct((n_pad, fout_pad), jnp.float32),
        grid_spec=pltpu.PrefetchScalarGridSpec(
            num_scalar_prefetch=0,
            grid=(n_pad // t, n_pad // t),
            in_specs=[
                pl.BlockSpec((t, t), lambda i, k: (i, k)),
                pl.BlockSpec((t, fout_pad), lambda i, k: (k, 0)),
            ],
            out_specs=pl.BlockSpec((t, fout_pad), lambda i, k: (i, 0)),
            scratch_shapes=[pltpu.VMEM((t, fout_pad), jnp.float32)],
        ),
        compiler_params=pltpu.CompilerParams(
            dimension_semantics=("parallel", "arbitrary")),
    )(adj_p, support)

    return out_p[:n, :fout]


if __name__ == "__main__":
    key = jax.random.PRNGKey(0)
    k_x, k_w, k_b, k_x2, k_w2, k_b2, k_a2 = jax.random.split(key, 7)

    # ---- Case 1: shapes implied by the reference script (fused path) --------
    # 4 nodes, 2 input features, hidden_dim = 64 outputs (first GCN layer).
    num_nodes, input_dim, output_dim = 4, 2, 64
    adj = jnp.array(
        [[0, 1, 1, 0],
         [1, 0, 0, 1],
         [1, 0, 0, 1],
         [0, 1, 1, 0]],
        dtype=jnp.float32,
    )
    x = jax.random.uniform(k_x, (num_nodes, input_dim), dtype=jnp.float32)
    bound = 1.0 / (input_dim ** 0.5)
    weight = jax.random.uniform(k_w, (output_dim, input_dim),
                                minval=-bound, maxval=bound, dtype=jnp.float32)
    bias = jax.random.uniform(k_b, (output_dim,),
                              minval=-bound, maxval=bound, dtype=jnp.float32)

    out = jax.block_until_ready(graph_convolution_layer(adj, x, weight, bias))
    ref = jnp.dot(
        adj,
        jnp.dot(x, weight.T, precision=jax.lax.Precision.HIGHEST) + bias,
        precision=jax.lax.Precision.HIGHEST)
    assert out.shape == (num_nodes, output_dim)
    err = float(jnp.max(jnp.abs(out - ref)))
    scale = float(jnp.max(jnp.abs(ref))) + 1e-6
    assert err / scale < 5e-2, (err, scale)   # bf16 MXU inputs, f32 accumulation

    # ---- Case 2: multi-tile grid (exercises the tiled k-accumulation path) --
    n2, fin2, fout2 = 200, 8, 32
    adj2 = (jax.random.uniform(k_a2, (n2, n2)) < 0.05).astype(jnp.float32)
    x2 = jax.random.uniform(k_x2, (n2, fin2), dtype=jnp.float32)
    b2 = 1.0 / (fin2 ** 0.5)
    w2 = jax.random.uniform(k_w2, (fout2, fin2), minval=-b2, maxval=b2,
                            dtype=jnp.float32)
    bias2 = jax.random.uniform(k_b2, (fout2,), minval=-b2, maxval=b2,
                               dtype=jnp.float32)
    out2 = jax.block_until_ready(
        graph_convolution_layer(adj2, x2, w2, bias2, tile=128,
                                compute_dtype=jnp.float32, allow_fused=False))
    ref2 = jnp.dot(
        adj2,
        jnp.dot(x2, w2.T, precision=jax.lax.Precision.HIGHEST) + bias2,
        precision=jax.lax.Precision.HIGHEST)
    err2 = float(jnp.max(jnp.abs(out2 - ref2)))
    scale2 = float(jnp.max(jnp.abs(ref2))) + 1e-6
    assert err2 / scale2 < 5e-2, (err2, scale2)

    print("KERNEL_OK")
</pallas_src>

<mosaic_0001>
module attributes {stable_mosaic.version = 11 : i64} {
  func.func @_fused_kernel(%arg0: memref<128x128xbf16, #tpu.memory_space<vmem>>, %arg1: memref<128x128xf32, #tpu.memory_space<vmem>>, %arg2: memref<128x128xf32, #tpu.memory_space<vmem>>, %arg3: memref<1x128xf32, #tpu.memory_space<vmem>>, %arg4: memref<128x128xf32, #tpu.memory_space<vmem>>) attributes {dimension_semantics = [], scalar_prefetch = 0 : i64, scratch_operands = 0 : i64, tpu.core_type = #tpu.core_type<tc>} {
    %c0 = arith.constant 0 : index
    %c0_0 = arith.constant 0 : index
    %0 = vector.load %arg1[%c0, %c0_0] : memref<128x128xf32, #tpu.memory_space<vmem>>, vector<128x128xf32>
    %c0_1 = arith.constant 0 : index
    %c0_2 = arith.constant 0 : index
    %1 = vector.load %arg2[%c0_1, %c0_2] : memref<128x128xf32, #tpu.memory_space<vmem>>, vector<128x128xf32>
    %cst = arith.constant dense<0.000000e+00> : vector<128x128xf32>
    %2 = tpu.matmul %0, %1, %cst {dimension_numbers = #tpu.dot_dimension_numbers<[1], [0], [0], [1], [0, 0, 1, 1], [], []>} : vector<128x128xf32>, vector<128x128xf32>, vector<128x128xf32> -> vector<128x128xf32>
    %c0_3 = arith.constant 0 : index
    %c0_4 = arith.constant 0 : index
    %3 = vector.load %arg3[%c0_3, %c0_4] : memref<1x128xf32, #tpu.memory_space<vmem>>, vector<1x128xf32>
    %4 = vector.broadcast %3 : vector<1x128xf32> to vector<128x128xf32>
    %5 = arith.addf %2, %4 : vector<128x128xf32>
    %c0_5 = arith.constant 0 : index
    %c0_6 = arith.constant 0 : index
    %6 = vector.load %arg0[%c0_5, %c0_6] : memref<128x128xbf16, #tpu.memory_space<vmem>>, vector<128x128xbf16>
    %7 = arith.truncf %5 : vector<128x128xf32> to vector<128x128xbf16>
    %cst_7 = arith.constant dense<0.000000e+00> : vector<128x128xf32>
    %8 = tpu.matmul %6, %7, %cst_7 {dimension_numbers = #tpu.dot_dimension_numbers<[1], [0], [0], [1], [0, 0, 1, 1], [], []>} : vector<128x128xbf16>, vector<128x128xbf16>, vector<128x128xf32> -> vector<128x128xf32>
    %c0_8 = arith.constant 0 : index
    %c0_9 = arith.constant 0 : index
    %9 = vector.load %arg4[%c0_8, %c0_9] : memref<128x128xf32, #tpu.memory_space<vmem>>, vector<128x128xf32>
    tpu.vector_store %arg4[%c0_8, %c0_9], %8 {strides = array<i32>} : memref<128x128xf32, #tpu.memory_space<vmem>>, vector<128x128xf32>,
    return
  }
}

</mosaic_0001>

<bundles_post_ra>
// kernel: graph_convolution_layer.1
= control target key start
LH: loop header
LB: loop body
LE: loop exit
PB: predicated region body
PF: predicated region fallthrough
CT: control target
= control target key end

     0   :  { %s740_s2 = inlined_call_operand.vmem [shape: f32[128,128], index: 2, kind: input, shape index: {}]   ;;  %s741_s1 = inlined_call_operand.vmem [shape: f32[128,128], index: 1, kind: input, shape index: {}]   ;;  %s742_s0 = inlined_call_operand.vmem [shape: bf16[128,128], index: 0, kind: input, shape index: {}]   ;;  %s743_s3 = inlined_call_operand.vmem [shape: f32[1,128], index: 3, kind: input, shape index: {}]   ;;  %s744_s4 = inlined_call_operand.vmem [shape: f32[128,128], index: 4, kind: output, shape index: {}]  }
   0x1   :  { %v49_v0 = vld [vmem:[%s740_s2 + $0x78] sm:$0xff]  ;;  %v48_v1 = vld [vmem:[%s740_s2 + $0x70] sm:$0xff]  ;;  %v47_v2 = vld [vmem:[%s740_s2 + $0x68] sm:$0xff] }
   0x2   :  { %448 = vmatprep.subr.mxu0 %v49_v0  ;;  %v46_v3 = vld [vmem:[%s740_s2 + $0x60] sm:$0xff]  ;;  %v45_v5 = vld [vmem:[%s740_s2 + $0x58] sm:$0xff]  ;;  %v44_v6 = vld [vmem:[%s740_s2 + $0x50] sm:$0xff] }
   0x3   :  { %449 = vmatpush3.msra.mxu0 %v49_v0  ;;  %v18_v4 = vld [vmem:[%s741_s1] sm:$0xff]  ;;  %v43_v7 = vld [vmem:[%s740_s2 + $0x48] sm:$0xff]  ;;  %v41_v9 = vld [vmem:[%s740_s2 + $0x38] sm:$0xff] }
   0x4   :  { %450 = vmatprep.subr.mxu0 %v48_v1  ;;  %480 = vmatprep.mubr.f32.mxu0 %v18_v4  ;;  %v42_v8 = vld [vmem:[%s740_s2 + $0x40] sm:$0xff]  ;;  %v40_v10 = vld [vmem:[%s740_s2 + $0x30] sm:$0xff]  ;;  %v39_v11 = vld [vmem:[%s740_s2 + $0x28] sm:$0xff] }
   0x5   :  { %451 = vmatpush3.msra.mxu0 %v48_v1  ;;  %v38_v12 = vld [vmem:[%s740_s2 + $0x20] sm:$0xff]  ;;  %v37_v13 = vld [vmem:[%s740_s2 + $0x18] sm:$0xff]  ;;  %v36_v14 = vld [vmem:[%s740_s2 + $0x10] sm:$0xff] }
   0x6   :  { %452 = vmatprep.subr.mxu0 %v47_v2  ;;  %v35_v15 = vld [vmem:[%s740_s2 + $0x8] sm:$0xff]  ;;  %v34_v16 = vld [vmem:[%s740_s2] sm:$0xff]  ;;  %v20_v18 = vld [vmem:[%s741_s1 + $0x10] sm:$0xff] }
   0x7   :  { %453 = vmatpush3.msra.mxu0 %v47_v2  ;;  %v19_v17 = vld [vmem:[%s741_s1 + $0x8] sm:$0xff]  ;;  %v21_v19 = vld [vmem:[%s741_s1 + $0x18] sm:$0xff]  ;;  %v22_v20 = vld [vmem:[%s741_s1 + $0x20] sm:$0xff] }
   0x8   :  { %454 = vmatprep.subr.mxu0 %v46_v3  ;;  %v23_v21 = vld [vmem:[%s741_s1 + $0x28] sm:$0xff]  ;;  %v24_v22 = vld [vmem:[%s741_s1 + $0x30] sm:$0xff]  ;;  %v25_v23 = vld [vmem:[%s741_s1 + $0x38] sm:$0xff] }
   0x9   :  { %455 = vmatpush3.msra.mxu0 %v46_v3  ;;  %v26_v24 = vld [vmem:[%s741_s1 + $0x40] sm:$0xff]  ;;  %v27_v25 = vld [vmem:[%s741_s1 + $0x48] sm:$0xff]  ;;  %v28_v26 = vld [vmem:[%s741_s1 + $0x50] sm:$0xff] }
   0xa   :  { %456 = vmatprep.subr.mxu0 %v45_v5  ;;  %v29_v27 = vld [vmem:[%s741_s1 + $0x58] sm:$0xff]  ;;  %v30_v28 = vld [vmem:[%s741_s1 + $0x60] sm:$0xff]  ;;  %v31_v29 = vld [vmem:[%s741_s1 + $0x68] sm:$0xff] }
   0xb   :  { %457 = vmatpush3.msra.mxu0 %v45_v5  ;;  %v32_v30 = vld [vmem:[%s741_s1 + $0x70] sm:$0xff]  ;;  %v33_v31 = vld [vmem:[%s741_s1 + $0x78] sm:$0xff]  ;;  %v536_v32 = vld [vmem:[%s742_s0] sm:$0xff]  }
   0xc   :  { %458 = vmatprep.subr.mxu0 %v44_v6  ;;  %520 = vmatprep.mubr.bf16.mxu1 %v536_v32  ;;  %v391_v48 = vld [vmem:[%s743_s3] ss:$0 sm:$0xff] }
   0xd   :  { %459 = vmatpush3.msra.mxu0 %v44_v6 }
   0xe   :  { %460 = vmatprep.subr.mxu0 %v43_v7 }
   0xf   :  { %461 = vmatpush3.msra.mxu0 %v43_v7 }
  0x10   :  { %462 = vmatprep.subr.mxu0 %v42_v8 }
  0x11   :  { %463 = vmatpush3.msra.mxu0 %v42_v8 }
  0x12   :  { %464 = vmatprep.subr.mxu0 %v41_v9 }
  0x13   :  { %465 = vmatpush3.msra.mxu0 %v41_v9 }
  0x14   :  { %466 = vmatprep.subr.mxu0 %v40_v10 }
  0x15   :  { %467 = vmatpush3.msra.mxu0 %v40_v10  ;;  %v537_v10 = vld [vmem:[%s742_s0 + $0x8] sm:$0xff]  }
  0x16   :  { %468 = vmatprep.subr.mxu0 %v39_v11 }
  0x17   :  { %469 = vmatpush3.msra.mxu0 %v39_v11  ;;  %v538_v11 = vld [vmem:[%s742_s0 + $0x10] sm:$0xff]  }
  0x18   :  { %470 = vmatprep.subr.mxu0 %v38_v12 }
  0x19   :  { %471 = vmatpush3.msra.mxu0 %v38_v12  ;;  %v539_v12 = vld [vmem:[%s742_s0 + $0x18] sm:$0xff]  }
  0x1a   :  { %472 = vmatprep.subr.mxu0 %v37_v13 }
  0x1b   :  { %473 = vmatpush3.msra.mxu0 %v37_v13  ;;  %v540_v13 = vld [vmem:[%s742_s0 + $0x20] sm:$0xff]  }
  0x1c   :  { %474 = vmatprep.subr.mxu0 %v36_v14 }
  0x1d   :  { %475 = vmatpush3.msra.mxu0 %v36_v14  ;;  %v541_v14 = vld [vmem:[%s742_s0 + $0x28] sm:$0xff]  }
  0x1e   :  { %476 = vmatprep.subr.mxu0 %v35_v15 }
  0x1f   :  { %477 = vmatpush3.msra.mxu0 %v35_v15  ;;  %v542_v15 = vld [vmem:[%s742_s0 + $0x30] sm:$0xff]  }
  0x20   :  { %478 = vmatprep.subr.mxu0 %v34_v16 }
  0x21   :  { %479 = vmatpush3.msra.mxu0 %v34_v16  ;;  %v543_v16 = vld [vmem:[%s742_s0 + $0x38] sm:$0xff]  }
  0x22   :  { %481 = vmatmul.mubr.f32.vlgmr.msra.gmra.mxu0 %v19_v17 }
  0x23   :  { %483 = vmatprep.mubr.f32.mxu0 %v20_v18 }
  0x26   :  { %484 = vmatmul.mubr.f32.gmra.mxu0 %v21_v19 }
  0x27   :  { %486 = vmatprep.mubr.f32.mxu0 %v22_v20 }
  0x2a   :  { %487 = vmatmul.mubr.f32.gmra.mxu0 %v23_v21 }
  0x2b   :  { %489 = vmatprep.mubr.f32.mxu0 %v24_v22 }
  0x2e   :  { %490 = vmatmul.mubr.f32.gmra.mxu0 %v25_v23 }
  0x2f   :  { %492 = vmatprep.mubr.f32.mxu0 %v26_v24 }
  0x32   :  { %493 = vmatmul.mubr.f32.gmra.mxu0 %v27_v25 }
  0x33   :  { %495 = vmatprep.mubr.f32.mxu0 %v28_v26 }
  0x36   :  { %496 = vmatmul.mubr.f32.gmra.mxu0 %v29_v27 }
  0x37   :  { %498 = vmatprep.mubr.f32.mxu0 %v30_v28 }
  0x3a   :  { %499 = vmatmul.mubr.f32.gmra.mxu0 %v31_v29 }
  0x3b   :  { %501 = vmatprep.mubr.f32.mxu0 %v32_v30 }
  0x3e   :  { %502 = vmatmul.mubr.f32.gmra.mxu0 %v33_v31 }
  0xe2   :  { %v482_v33 = vpop.f32.mrf.mxu0 }
  0xe3   :  { %v129_v8 = vadd.f32 %v482_v33, %v391_v48 }
  0xe4   :  { %v123_v34 = vpop.f32.mrf.mxu0 }
  0xe5   :  { %v124_v6 = vadd.f32 %v391_v48, %v123_v34 }
  0xe6   :  { %v485_v35 = vpop.f32.mrf.mxu0 }
  0xe7   :  { %v139_v5 = vadd.f32 %v485_v35, %v391_v48  ;;  %v218_v9 = vpack.c.bf16 %v129_v8, %v124_v6 }
  0xe8   :  { %v133_v36 = vpop.f32.mrf.mxu0 }
  0xe9   :  { %v134_v3 = vadd.f32 %v391_v48, %v133_v36 }
  0xea   :  { %v488_v37 = vpop.f32.mrf.mxu0 }
  0xeb   :  { %v149_v2 = vadd.f32 %v488_v37, %v391_v48  ;;  %v219_v7 = vpack.c.bf16 %v139_v5, %v134_v3 }
  0xec   :  { %v143_v38 = vpop.f32.mrf.mxu0 }
  0xed   :  { %v144_v0 = vadd.f32 %v391_v48, %v143_v38 }
  0xee   :  { %v491_v39 = vpop.f32.mrf.mxu0 }
  0xef   :  { %v159_v63 = vadd.f32 %v491_v39, %v391_v48  ;;  %v220_v4 = vpack.c.bf16 %v149_v2, %v144_v0 }
  0xf0   :  { %v153_v40 = vpop.f32.mrf.mxu0 }
  0xf1   :  { %v154_v61 = vadd.f32 %v391_v48, %v153_v40 }
  0xf2   :  { %v494_v41 = vpop.f32.mrf.mxu0 }
  0xf3   :  { %v169_v60 = vadd.f32 %v494_v41, %v391_v48  ;;  %v221_v1 = vpack.c.bf16 %v159_v63, %v154_v61 }
  0xf4   :  { %v163_v42 = vpop.f32.mrf.mxu0 }
  0xf5   :  { %v164_v58 = vadd.f32 %v391_v48, %v163_v42 }
  0xf6   :  { %v497_v43 = vpop.f32.mrf.mxu0 }
  0xf7   :  { %v179_v57 = vadd.f32 %v497_v43, %v391_v48  ;;  %v222_v62 = vpack.c.bf16 %v169_v60, %v164_v58 }
  0xf8   :  { %v173_v44 = vpop.f32.mrf.mxu0 }
  0xf9   :  { %v174_v55 = vadd.f32 %v391_v48, %v173_v44 }
  0xfa   :  { %v500_v45 = vpop.f32.mrf.mxu0 }
  0xfb   :  { %v189_v53 = vadd.f32 %v500_v45, %v391_v48  ;;  %v223_v59 = vpack.c.bf16 %v179_v57, %v174_v55 }
  0xfc   :  { %v183_v46 = vpop.f32.mrf.mxu0 }
  0xfd   :  { %v184_v50 = vadd.f32 %v391_v48, %v183_v46 }
  0xfe   :  { %v503_v47 = vpop.f32.mrf.mxu0 }
  0xff   :  { %v199_v51 = vadd.f32 %v503_v47, %v391_v48  ;;  %v224_v56 = vpack.c.bf16 %v189_v53, %v184_v50 }
 0x100   :  { %v193_v49 = vpop.f32.mrf.mxu0 }
 0x101   :  { %v194_v52 = vadd.f32 %v391_v48, %v193_v49 }
 0x103   :  { %v225_v54 = vpack.c.bf16 %v199_v51, %v194_v52 }
 0x105   :  { %504 = vmatprep.subr.bf16.mxu1 %v225_v54 }
 0x106   :  { %505 = vmatpush3.bf16.msra.mxu1 %v225_v54 }
 0x107   :  { %506 = vmatprep.subr.bf16.mxu1 %v224_v56 }
 0x10a   :  { %507 = vmatpush3.bf16.msra.mxu1 %v224_v56 }
 0x10b   :  { %508 = vmatprep.subr.bf16.mxu1 %v223_v59 }
 0x10e   :  { %509 = vmatpush3.bf16.msra.mxu1 %v223_v59 }
 0x10f   :  { %510 = vmatprep.subr.bf16.mxu1 %v222_v62 }
 0x112   :  { %511 = vmatpush3.bf16.msra.mxu1 %v222_v62 }
 0x113   :  { %512 = vmatprep.subr.bf16.mxu1 %v221_v1 }
 0x116   :  { %513 = vmatpush3.bf16.msra.mxu1 %v221_v1 }
 0x117   :  { %514 = vmatprep.subr.bf16.mxu1 %v220_v4 }
 0x11a   :  { %515 = vmatpush3.bf16.msra.mxu1 %v220_v4 }
 0x11b   :  { %516 = vmatprep.subr.bf16.mxu1 %v219_v7 }
 0x11e   :  { %517 = vmatpush3.bf16.msra.mxu1 %v219_v7 }
 0x11f   :  { %518 = vmatprep.subr.bf16.mxu1 %v218_v9 }
 0x122   :  { %519 = vmatpush3.bf16.msra.mxu1 %v218_v9 }
 0x125   :  { %521 = vmatmul.mubr.bf16.vlgmr.msra.gmra.mxu1 %v537_v10 }
 0x126   :  { %524 = vmatprep.mubr.bf16.mxu1 %v538_v11 }
 0x12d   :  { %525 = vmatmul.mubr.bf16.gmra.mxu1 %v539_v12 }
 0x12e   :  { %528 = vmatprep.mubr.bf16.mxu1 %v540_v13 }
 0x135   :  { %529 = vmatmul.mubr.bf16.gmra.mxu1 %v541_v14 }
 0x136   :  { %532 = vmatprep.mubr.bf16.mxu1 %v542_v15 }
 0x13d   :  { %533 = vmatmul.mubr.bf16.gmra.mxu1 %v543_v16 }
 0x1e5   :  { %v522_v17 = vpop.f32.mrf.mxu1 }
 0x1e6   :  { %373 = vst [vmem:[%s744_s4 + $0x10] sm:$0xff] %v522_v17 }
 0x1e7   :  { %v308_v18 = vpop.f32.mrf.mxu1 }
 0x1e8   :  { %371 = vst [vmem:[%s744_s4] sm:$0xff] %v308_v18 }
 0x1e9   :  { %v523_v19 = vpop.f32.mrf.mxu1 }
 0x1ea   :  { %374 = vst [vmem:[%s744_s4 + $0x18] sm:$0xff] %v523_v19 }
 0x1eb   :  { %v311_v20 = vpop.f32.mrf.mxu1 }
 0x1ec   :  { %372 = vst [vmem:[%s744_s4 + $0x8] sm:$0xff] %v311_v20 }
 0x1ed   :  { %v526_v21 = vpop.f32.mrf.mxu1 }
 0x1ee   :  { %377 = vst [vmem:[%s744_s4 + $0x30] sm:$0xff] %v526_v21 }
 0x1ef   :  { %v324_v22 = vpop.f32.mrf.mxu1 }
 0x1f0   :  { %375 = vst [vmem:[%s744_s4 + $0x20] sm:$0xff] %v324_v22 }
 0x1f1   :  { %v527_v23 = vpop.f32.mrf.mxu1 }
 0x1f2   :  { %378 = vst [vmem:[%s744_s4 + $0x38] sm:$0xff] %v527_v23 }
 0x1f3   :  { %v327_v24 = vpop.f32.mrf.mxu1 }
 0x1f4   :  { %376 = vst [vmem:[%s744_s4 + $0x28] sm:$0xff] %v327_v24 }
 0x1f5   :  { %v530_v25 = vpop.f32.mrf.mxu1 }
 0x1f6   :  { %381 = vst [vmem:[%s744_s4 + $0x50] sm:$0xff] %v530_v25 }
 0x1f7   :  { %v340_v26 = vpop.f32.mrf.mxu1 }
 0x1f8   :  { %379 = vst [vmem:[%s744_s4 + $0x40] sm:$0xff] %v340_v26 }
 0x1f9   :  { %v531_v27 = vpop.f32.mrf.mxu1 }
 0x1fa   :  { %382 = vst [vmem:[%s744_s4 + $0x58] sm:$0xff] %v531_v27 }
 0x1fb   :  { %v343_v28 = vpop.f32.mrf.mxu1 }
 0x1fc   :  { %380 = vst [vmem:[%s744_s4 + $0x48] sm:$0xff] %v343_v28 }
 0x1fd   :  { %v534_v29 = vpop.f32.mrf.mxu1 }
 0x1fe   :  { %385 = vst [vmem:[%s744_s4 + $0x70] sm:$0xff] %v534_v29 }
 0x1ff   :  { %v356_v30 = vpop.f32.mrf.mxu1 }
 0x200   :  { %383 = vst [vmem:[%s744_s4 + $0x60] sm:$0xff] %v356_v30 }
 0x201   :  { %v535_v31 = vpop.f32.mrf.mxu1 }
 0x202   :  { %386 = vst [vmem:[%s744_s4 + $0x78] sm:$0xff] %v535_v31 }
 0x203   :  { %v359_v32 = vpop.f32.mrf.mxu1 }
 0x204   :  { %384 = vst [vmem:[%s744_s4 + $0x68] sm:$0xff] %v359_v32 }

</bundles_post_ra>
